<compile_context>
chip_gen: v7x
topology: tpu7x:2x2x1
jax: 0.10.0
libtpu: 0.0.40
codegen_flags: <defaults>
</compile_context>

<pallas_src>
import functools

import jax
import jax.numpy as jnp
from jax.experimental import pallas as pl
from jax.experimental.pallas import tpu as pltpu


LANE = 128           # TPU lane width; class axis is padded to a multiple.
NEG_MASK = -1e30     # finite additive mask for padded class lanes.
MAX_TILE_N = 2048


def _round_up(x: int, m: int) -> int:
    return ((x + m - 1) // m) * m


def _make_sgc_kernel(precision):
    """Kernel body: linear (MXU, f32 accumulate) + bias/mask add + log-softmax."""

    def kernel(x_ref, w_ref, a_ref, o_ref):
        logits = jnp.dot(x_ref[...], w_ref[...],
                         preferred_element_type=jnp.float32,
                         precision=precision)
        # Bias folded together with the class-padding mask (-1e30 on padded
        # lanes), so no per-tile iota/where is needed.
        logits = logits + a_ref[...]

        # Numerically stable log-softmax over the class (lane) axis.
        m = jnp.max(logits, axis=-1, keepdims=True)
        shifted = logits - m
        lse = jnp.log(jnp.sum(jnp.exp(shifted), axis=-1, keepdims=True))
        o_ref[...] = (shifted - lse).astype(o_ref.dtype)

    return kernel


def prepare_sgc_params(weight, bias, *, param_dtype=None):
    """One-time parameter prep (model setup, NOT per call):
      - transpose nn.Linear W [C, F] -> [F, C_pad], class axis padded to 128,
      - fold bias and the class-padding mask into one additive [1, C_pad] f32
        vector (padded lanes carry -1e30).
    param_dtype=jnp.bfloat16 halves the resident-W stream; the matching
    feature cast must be done upstream where x is produced/stored."""
    c, f = weight.shape
    c_pad = _round_up(max(c, LANE), LANE)
    wdt = jnp.dtype(param_dtype) if param_dtype is not None else weight.dtype
    w_t = jnp.zeros((f, c_pad), dtype=wdt).at[:, :c].set(weight.T.astype(wdt))

    add_vec = jnp.full((1, c_pad), NEG_MASK, dtype=jnp.float32)
    if bias is not None:
        add_vec = add_vec.at[0, :c].set(bias.astype(jnp.float32))
    else:
        add_vec = add_vec.at[0, :c].set(0.0)
    return w_t, add_vec, c


def _vmem_budget_bytes() -> int:
    try:
        cap = int(pltpu.get_tpu_info().vmem_capacity_bytes)
    except Exception:
        cap = 64 << 20            # conservative (v7x-sized) fallback
    # ~75% of physical VMEM: ~96 MiB on v5e/v6e (128 MiB parts), ~48 MiB on
    # v7x (64 MiB) -- leaves the compiler scratch headroom on every gen.
    return int(min((cap * 3) // 4, 100 << 20))


def _choose_tile_n(n, per_row_bytes, resident_bytes, budget, sub):
    avail = budget - resident_bytes
    tn = max(avail // per_row_bytes, sub)
    tn = min(tn, MAX_TILE_N)
    if tn >= 256:
        tn = (tn // 256) * 256
    else:
        tn = max((tn // sub) * sub, sub)
    if tn >= n:
        if n > 2 * sub:
            # Whole problem fits one tile: split into two so the "parallel"
            # row-tile axis feeds both TensorCores on v7x (neutral on 1-TC).
            tn = _round_up(pl.cdiv(n, 2), sub)
        else:
            tn = n            # block rows == full array dim (no partial block)
    return int(tn)


@functools.partial(jax.jit, static_argnames=("n_class", "tile_n"))
def sgc_forward(x, w_padded, add_vec, *, n_class: int, tile_n=None):
    """x: [N, F] (f32 or bf16); w_padded: [F, C_pad]; add_vec: [1, C_pad] f32.
    Returns float32 log-probabilities of shape [N, n_class]."""
    n, f = x.shape
    f_w, c_pad = w_padded.shape
    assert f_w == f and c_pad % LANE == 0

    itemsize_x = jnp.dtype(x.dtype).itemsize
    itemsize_w = jnp.dtype(w_padded.dtype).itemsize
    sub = 16 if itemsize_x == 2 else 8           # sublane packing (bf16 / f32)
    f_pad = _round_up(f, LANE)                   # lane padding inside VMEM

    budget = _vmem_budget_bytes()
    # Resident operands (both pipeline buffers counted) + per-row bytes of the
    # double-buffered x tile and the f32 output tile, lane-padding aware.
    resident = 2 * f_pad * c_pad * itemsize_w + 2 * c_pad * 4
    per_row = 2 * (f_pad * itemsize_x + c_pad * 4)

    if tile_n is None:
        tn = _choose_tile_n(n, per_row, resident, budget, sub)
    else:
        tn = min(int(tile_n), n)

    grid = (pl.cdiv(n, tn),)          # partial last block handled by Pallas

    vmem_needed = resident + tn * per_row
    vmem_limit = int(min(budget, max(vmem_needed + (4 << 20), 16 << 20)))

    # f32 features: pin true-f32 MXU passes (exactness guaranteed).  bf16
    # features: MXU takes them natively with f32 accumulation.
    precision = (jax.lax.Precision.HIGHEST if x.dtype == jnp.float32
                 else jax.lax.Precision.DEFAULT)

    out = pl.pallas_call(
        _make_sgc_kernel(precision),
        out_shape=jax.ShapeDtypeStruct((n, c_pad), jnp.float32),
        grid_spec=pl.GridSpec(
            grid=grid,
            in_specs=[
                pl.BlockSpec((tn, f), lambda i: (i, 0)),        # x: row-tiled
                pl.BlockSpec((f, c_pad), lambda i: (0, 0)),     # W: resident
                pl.BlockSpec((1, c_pad), lambda i: (0, 0)),     # bias+mask
            ],
            out_specs=pl.BlockSpec((tn, c_pad), lambda i: (i, 0)),
        ),
        compiler_params=pltpu.CompilerParams(
            dimension_semantics=("parallel",),    # row tiles are independent
            vmem_limit_bytes=vmem_limit,
        ),
    )(x, w_padded, add_vec)

    # Consumers that tolerate the masked padded class lanes (argmax, NLL
    # gather) can take `out` directly and skip this slice copy.
    return out[:, :n_class] if c_pad > n_class else out


def reference_sgc(x, weight, bias):
    logits = jnp.dot(x.astype(jnp.float32), weight.T.astype(jnp.float32),
                     precision=jax.lax.Precision.HIGHEST)
    if bias is not None:
        logits = logits + bias.astype(jnp.float32)
    return jax.nn.log_softmax(logits, axis=1)


if __name__ == "__main__":
    key = jax.random.PRNGKey(0)
    n_nodes, n_feat, n_class = 8, 32, 16
    enable_bias = True

    k_x, k_w, k_b = jax.random.split(key, 3)
    x = jax.random.normal(k_x, (n_nodes, n_feat), dtype=jnp.float32)
    # nn.Linear parameter shapes: W [C, F], b [C].
    bound = 1.0 / (n_feat ** 0.5)
    weight = jax.random.uniform(k_w, (n_class, n_feat), jnp.float32, -bound, bound)
    bias = (jax.random.uniform(k_b, (n_class,), jnp.float32, -bound, bound)
            if enable_bias else None)

    ref = reference_sgc(x, weight, bias)

    # ---- f32 feature path (exact: precision=HIGHEST in the kernel) --------
    w_pad, add_vec, c = prepare_sgc_params(weight, bias)
    out = sgc_forward(x, w_pad, add_vec, n_class=c)
    jax.block_until_ready(out)
    assert out.shape == (n_nodes, n_class)
    assert jnp.allclose(out, ref, atol=1e-5, rtol=1e-5), "f32 mismatch vs reference"

    # ---- bf16 feature path (cast done "upstream"; f32 accumulate/epilogue) -
    w_pad16, add_vec16, _ = prepare_sgc_params(weight, bias,
                                               param_dtype=jnp.bfloat16)
    x_bf16 = x.astype(jnp.bfloat16)   # stands in for upstream-stored bf16 feats
    out16 = sgc_forward(x_bf16, w_pad16, add_vec16, n_class=c)
    jax.block_until_ready(out16)
    assert out16.shape == (n_nodes, n_class)
    assert float(jnp.max(jnp.abs(out16 - ref))) < 0.25, "bf16 path off reference"

    print("KERNEL_OK")
</pallas_src>

<mosaic_0001>
module attributes {stable_mosaic.version = 11 : i64} {
  func.func @kernel(%arg0: i32, %arg1: memref<8x32xf32, #tpu.memory_space<vmem>>, %arg2: memref<32x128xf32, #tpu.memory_space<vmem>>, %arg3: memref<1x128xf32, #tpu.memory_space<vmem>>, %arg4: memref<8x128xf32, #tpu.memory_space<vmem>>) attributes {dimension_semantics = [#tpu.dimension_semantics<parallel>], iteration_bounds = array<i64: 1>, scalar_prefetch = 0 : i64, scratch_operands = 0 : i64, tpu.core_type = #tpu.core_type<tc>, window_params = [{transform_indices = @transform_0, window_bounds = array<i64: 8, 32>}, {pipeline_mode = #tpu.pipeline_mode<synchronous>, transform_indices = @transform_1, window_bounds = array<i64: 32, 128>}, {pipeline_mode = #tpu.pipeline_mode<synchronous>, transform_indices = @transform_2, window_bounds = array<i64: 1, 128>}, {transform_indices = @transform_3, window_bounds = array<i64: 8, 128>}]} {
    %c0 = arith.constant 0 : index
    %c0_0 = arith.constant 0 : index
    %0 = vector.load %arg1[%c0, %c0_0] : memref<8x32xf32, #tpu.memory_space<vmem>>, vector<8x32xf32>
    %c0_1 = arith.constant 0 : index
    %c0_2 = arith.constant 0 : index
    %1 = vector.load %arg2[%c0_1, %c0_2] : memref<32x128xf32, #tpu.memory_space<vmem>>, vector<32x128xf32>
    %cst = arith.constant dense<0.000000e+00> : vector<8x128xf32>
    %2 = tpu.matmul %0, %1, %cst {dimension_numbers = #tpu.dot_dimension_numbers<[1], [0], [0], [1], [0, 0, 1, 1], [], []>, precision = #tpu.contract_precision<fp32>} : vector<8x32xf32>, vector<32x128xf32>, vector<8x128xf32> -> vector<8x128xf32>
    %c0_3 = arith.constant 0 : index
    %c0_4 = arith.constant 0 : index
    %3 = vector.load %arg3[%c0_3, %c0_4] : memref<1x128xf32, #tpu.memory_space<vmem>>, vector<1x128xf32>
    %4 = vector.broadcast %3 : vector<1x128xf32> to vector<8x128xf32>
    %5 = arith.addf %2, %4 : vector<8x128xf32>
    %cst_5 = arith.constant dense<0xFF800000> : vector<8xf32>
    %6 = vector.multi_reduction <maximumf>, %5, %cst_5 [1] : vector<8x128xf32> to vector<8xf32>
    %7 = vector.shape_cast %6 : vector<8xf32> to vector<8x1xf32>
    %8 = vector.broadcast %7 : vector<8x1xf32> to vector<8x128xf32>
    %9 = arith.subf %5, %8 : vector<8x128xf32>
    %10 = math.exp %9 : vector<8x128xf32>
    %cst_6 = arith.constant dense<0.000000e+00> : vector<8xf32>
    %11 = vector.multi_reduction <add>, %10, %cst_6 [1] : vector<8x128xf32> to vector<8xf32>
    %12 = vector.shape_cast %11 : vector<8xf32> to vector<8x1xf32>
    %13 = math.log %12 : vector<8x1xf32>
    %14 = vector.broadcast %13 : vector<8x1xf32> to vector<8x128xf32>
    %15 = arith.subf %9, %14 : vector<8x128xf32>
    %c0_7 = arith.constant 0 : index
    %c0_8 = arith.constant 0 : index
    %16 = vector.load %arg4[%c0_7, %c0_8] : memref<8x128xf32, #tpu.memory_space<vmem>>, vector<8x128xf32>
    tpu.vector_store %arg4[%c0_7, %c0_8], %15 {strides = array<i32>} : memref<8x128xf32, #tpu.memory_space<vmem>>, vector<8x128xf32>,
    return
  }
  func.func @transform_0(%arg0: i32) -> (i32, i32) {
    %c0_i32 = arith.constant 0 : i32
    %c0_i32_0 = arith.constant 0 : i32
    return %arg0, %c0_i32 : i32, i32
  }
  func.func @transform_1(%arg0: i32) -> (i32, i32) {
    %c0_i32 = arith.constant 0 : i32
    %c0_i32_0 = arith.constant 0 : i32
    %c0_i32_1 = arith.constant 0 : i32
    return %c0_i32, %c0_i32_0 : i32, i32
  }
  func.func @transform_2(%arg0: i32) -> (i32, i32) {
    %c0_i32 = arith.constant 0 : i32
    %c0_i32_0 = arith.constant 0 : i32
    %c0_i32_1 = arith.constant 0 : i32
    return %c0_i32, %c0_i32_0 : i32, i32
  }
  func.func @transform_3(%arg0: i32) -> (i32, i32) {
    %c0_i32 = arith.constant 0 : i32
    %c0_i32_0 = arith.constant 0 : i32
    return %arg0, %c0_i32 : i32, i32
  }
}

</mosaic_0001>

<bundles_post_ra>
// kernel: sgc_forward.1
= control target key start
LH: loop header
LB: loop body
LE: loop exit
PB: predicated region body
PF: predicated region fallthrough
CT: control target
= control target key end

     0   :  { %8 = vsyncpa [#allocation3], 0  ;;  %s894_s0 = inlined_call_operand.hbm [shape: f32[8,32], index: 0, kind: input, shape index: {}]   ;;  %s895_s1 = inlined_call_operand.hbm [shape: f32[32,128], index: 1, kind: input, shape index: {}]   ;;  %s896_s2 = inlined_call_operand.vmem [shape: f32[1,128], index: 2, kind: input, shape index: {}]   ;;  %s897_s3 = inlined_call_operand.hbm [shape: f32[8,128], index: 3, kind: output, shape index: {}]  }
   0x1   :  { %9 = vsyncpa [#allocation6], 0 }
   0x2   :  { %10 = vsyncpa [#allocation4], 0  ;;  %s796_s12 = smov [#allocation2]   ;;  %s797_s14 = smov [#allocation5]  }
   0x3   :  { %s17_s13 = sshll.u32 %s796_s12, 4  ;;  %s26_s15 = sshll.u32 %s797_s14, 4  ;;  %s18_s13 = int_to_ptr.vmem [resolvable:$true] %s17_s13  ;;  %s824_s15 = int_to_ptr.vmem [resolvable:$true] %s26_s15 }
   0x4   :  { %s724_s18 = scalar_lea.hbm %s894_s0, 128 }
   0x5   :  { %p725_p0 = scmp.ne.s32.totalorder %s894_s0, %s724_s18  ;;  %p728_p1 = scmp.lt.u32.totalorder %s724_s18, %s894_s0 }
   0x7   :  { %p730_p2 = pnand %p728_p1, %p725_p0 }
   0x9   :  { %733 = shalt.err (!%p730_p2)
}
   0xa   :  { %s734_s23 = scalar_lea.vmem %s18_s13, 128  ;;  %p739_p4 = scmp.lt.s32.totalorder %s18_s13, %s18_s13 }
   0xb   :  { %p735_p3 = scmp.ne.s32.totalorder %s18_s13, %s734_s23  ;;  %p740_p5 = scmp.lt.s32.totalorder %s734_s23, %s734_s23 }
   0xd   :  { %p741_p6 = por %p740_p5, %p739_p4 }
   0xf   :  { %p742_p7 = pnand %p741_p6, %p735_p3 }
  0x11   :  { %745 = shalt.err (!%p742_p7)
}
  0x12   :  { %20 = dma.hbm_to_vmem [thread:$0]  %s894_s0, 128, %s18_s13, [#allocation3]  }
  0x13   :  { %s746_s28 = scalar_lea.hbm %s895_s1, 512 }
  0x14   :  { %p747_p8 = scmp.ne.s32.totalorder %s895_s1, %s746_s28  ;;  %p750_p9 = scmp.lt.u32.totalorder %s746_s28, %s895_s1 }
  0x16   :  { %p752_p10 = pnand %p750_p9, %p747_p8 }
  0x18   :  { %755 = shalt.err (!%p752_p10)
}
  0x19   :  { %s756_s6 = scalar_lea.vmem %s824_s15, 512  ;;  %p761_p12 = scmp.lt.s32.totalorder %s824_s15, %s824_s15 }
  0x1a   :  { %p757_p11 = scmp.ne.s32.totalorder %s824_s15, %s756_s6  ;;  %p762_p13 = scmp.lt.s32.totalorder %s756_s6, %s756_s6 }
  0x1c   :  { %p763_p0 = por %p762_p13, %p761_p12 }
  0x1e   :  { %p764_p1 = pnand %p763_p0, %p757_p11 }
  0x20   :  { %767 = shalt.err (!%p764_p1)
}
  0x21   :  { %s798_s0 = smov 128   ;;  %s799_s7 = smov 8  }
  0x22   :  { %32 = dma.hbm_to_vmem [thread:$0]  %s895_s1, 512, %s824_s15, [#allocation6], %s798_s0, %s798_s0, %s799_s7  }
  0x23   :  { %790 = dma.done.wait [#allocation3], 128  }
  0x24   :  { %791 = vsyncadd [#allocation3], 4294967168 }
  0x25   :  { %792 = dma.done.wait [#allocation6], 512  }
  0x26   :  { %793 = vsyncadd [#allocation6], 4294966784  ;;  %v800_v0 = vmov 0.0|0.0   ;;  %vm801_vm0 = vmmov 0   ;;  %v802_v1 = vmov 0.0   ;;  %vm53_vm1 = vcmask 261120  }
  0x27   :  { %666 = vmatprep.subr.bf16.mxu1 %v800_v0  ;;  %684 = vmatprep.subr.bf16.mxu0 %v800_v0  ;;  %v42_v2 = vld [vmem:[#allocation5] sm:$0xff]  ;;  %v43_v3 = vld [vmem:[#allocation5 + $0x8] sm:$0xff]  ;;  %v44_v4 = vld [vmem:[#allocation5 + $0x10] sm:$0xff]  ;;  %s803_s11 = smov [#allocation7]  }
  0x28   :  { %608 = vmatprep.mubr.msk.f32.mxu1 %vm801_vm0, %v802_v1  ;;  %641 = vmatprep.mubr.msk.f32.mxu0 %vm801_vm0, %v802_v1  ;;  %v58_v5 = vand.u32 4294901760, %v42_v2  ;;  %v61_v6 = vand.u32 4294901760, %v43_v3  ;;  %v45_v7 = vld [vmem:[#allocation5 + $0x18] sm:$0xff]  ;;  %v64_v8 = vand.u32 4294901760, %v44_v4  ;;  %s559_s12 = sshll.u32 %s803_s11, 4  ;;  %s560_s12 = int_to_ptr.vmem [resolvable:$true] %s559_s12 }
  0x29   :  { %v41_v9 = vld [vmem:[#allocation2] sm:$0xff]  ;;  %v67_v10 = vand.u32 4294901760, %v45_v7  ;;  %p773_p3 = scmp.lt.s32.totalorder %s560_s12, %s560_s12 }
  0x2a   :  { %v55_v11 = vsel %vm53_vm1, %v41_v9, 0  ;;  %v667_v12 = vpack.c.bf16 %v61_v6, %v58_v5  ;;  %v138_v13 = vsub.f32 %v42_v2, %v58_v5  ;;  %v145_v14 = vsub.f32 %v43_v3, %v61_v6  ;;  %v569_v41 = vld [vmem:[%s896_s2] ss:$0 sm:$0xff]  ;;  %s768_s2 = scalar_lea.vmem %s560_s12, 128 }
  0x2b   :  { %v152_v15 = vsub.f32 %v44_v4, %v64_v8  ;;  %v159_v16 = vsub.f32 %v45_v7, %v67_v10  ;;  %v126_v17 = vand.u32 4294901760, %v55_v11  ;;  %v670_v18 = vpack.c.bf16 %v67_v10, %v64_v8  ;;  %p769_p2 = scmp.ne.s32.totalorder %s560_s12, %s768_s2  ;;  %p774_p4 = scmp.lt.s32.totalorder %s768_s2, %s768_s2 }
  0x2c   :  { %668 = vmatpush3.bf16.msra.mxu1 %v667_v12  ;;  %686 = vmatpush3.bf16.msra.mxu0 %v667_v12  ;;  %v139_v19 = vand.u32 4294901760, %v138_v13  ;;  %v146_v20 = vand.u32 4294901760, %v145_v14  ;;  %v679_v39 = vpack.c.bf16 %v145_v14, %v138_v13 }
  0x2d   :  { %v153_v21 = vand.u32 4294901760, %v152_v15  ;;  %669 = vmatprep.subr.bf16.mxu1 %v800_v0  ;;  %687 = vmatprep.subr.bf16.mxu0 %v800_v0  ;;  %v127_v22 = vsub.f32 %v55_v11, %v126_v17  ;;  %v160_v23 = vand.u32 4294901760, %v159_v16  ;;  %v682_v40 = vpack.c.bf16 %v159_v16, %v152_v15  ;;  %p775_p5 = por %p774_p4, %p773_p3 }
  0x2e   :  { %v140_v24 = vsub.f32 %v138_v13, %v139_v19  ;;  %v147_v25 = vsub.f32 %v145_v14, %v146_v20  ;;  %v691_v31 = vpack.c.bf16 %v146_v20, %v139_v19 }
  0x2f   :  { %v154_v26 = vsub.f32 %v152_v15, %v153_v21  ;;  %v128_v27 = vand.u32 4294901760, %v127_v22  ;;  %v161_v28 = vsub.f32 %v159_v16, %v160_v23  ;;  %v694_v37 = vpack.c.bf16 %v160_v23, %v153_v21  ;;  %p776_p6 = pnand %p775_p5, %p769_p2 }
  0x30   :  { %671 = vmatpush3.bf16.msra.mxu1 %v670_v18  ;;  %689 = vmatpush3.bf16.msra.mxu0 %v670_v18  ;;  %v141_v29 = vand.u32 4294901760, %v140_v24  ;;  %v148_v30 = vand.u32 4294901760, %v147_v25 }
  0x31   :  { %v129_v32 = vsub.f32 %v127_v22, %v128_v27  ;;  %672 = vmatprep.subr.bf16.mxu1 %v800_v0  ;;  %690 = vmatprep.subr.bf16.mxu0 %v800_v0  ;;  %v155_v34 = vand.u32 4294901760, %v154_v26  ;;  %v162_v35 = vand.u32 4294901760, %v161_v28 }
  0x32   :  { %v673_v33 = vpack.c.bf16 %v148_v30, %v141_v29 }
  0x33   :  { %v130_v36 = vand.u32 4294901760, %v129_v32  ;;  %642 = vmatmul.mubr.f32.vlgmr.msra.gmra.mrb[0].mxu0 %v128_v27  ;;  %v676_v38 = vpack.c.bf16 %v162_v35, %v155_v34 }
  0x34   :  { %692 = vmatpush3.bf16.msra.mxu0 %v691_v31  ;;  %652 = vmatprep.mubr.msk.f32.mxu0 %vm801_vm0, %v802_v1 }
  0x35   :  { %609 = vmatmul.mubr.f32.vlgmr.msra.gmra.mrb[0].mxu1 %v130_v36  ;;  %693 = vmatprep.subr.bf16.mxu0 %v800_v0 }
  0x36   :  { %674 = vmatpush3.bf16.msra.mxu1 %v673_v33  ;;  %619 = vmatprep.mubr.msk.f32.mxu1 %vm801_vm0, %v802_v1 }
  0x37   :  { %675 = vmatprep.subr.bf16.mxu1 %v800_v0 }
  0x38   :  { %695 = vmatpush3.bf16.msra.mxu0 %v694_v37 }
  0x39   :  { %696 = vmatprep.subr.bf16.mxu0 %v800_v0 }
  0x3a   :  { %677 = vmatpush3.bf16.msra.mxu1 %v676_v38 }
  0x3b   :  { %678 = vmatprep.subr.bf16.mxu1 %v800_v0  ;;  %653 = vmatmul.mubr.f32.vlgmr.msra.gmra.mrb[0].mxu0 %v126_v17 }
  0x3c   :  { %698 = vmatpush3.bf16.msra.mxu0 %v667_v12  ;;  %663 = vmatprep.mubr.msk.f32.mxu0 %vm801_vm0, %v802_v1 }
  0x3d   :  { %620 = vmatmul.mubr.f32.vlgmr.msra.gmra.mrb[0].mxu1 %v126_v17  ;;  %699 = vmatprep.subr.bf16.mxu0 %v800_v0 }
  0x3e   :  { %680 = vmatpush3.bf16.msra.mxu1 %v679_v39  ;;  %630 = vmatprep.mubr.msk.f32.mxu1 %vm801_vm0, %v802_v1 }
  0x3f   :  { %681 = vmatprep.subr.bf16.mxu1 %v800_v0 }
  0x40   :  { %701 = vmatpush3.bf16.msra.mxu0 %v670_v18 }
  0x42   :  { %683 = vmatpush3.bf16.msra.mxu1 %v682_v40 }
  0x43   :  { %664 = vmatmul.mubr.f32.vlgmr.msra.gmra.mrb[0].mxu0 %v126_v17 }
  0x45   :  { %631 = vmatmul.mubr.f32.vlgmr.msra.gmra.mrb[0].mxu1 %v127_v22 }
 0x116   :  { %v538_v42 = vpop.f32.mrb[0].mxu0 }
 0x117   :  { %v665_v43 = vpop.f32.mrb[1].mxu0 }
 0x118   :  { %v303_v44 = vpop.f32.mrb[0].mxu1 }
 0x119   :  { %v702_v45 = vadd.f32 %v569_v41, %v303_v44  ;;  %v632_v46 = vpop.f32.mrb[1].mxu1 }
 0x11b   :  { %v703_v47 = vadd.f32 %v702_v45, %v538_v42 }
 0x11d   :  { %542 = vmax.xlane.f32.xlu0 %v703_v47 }
 0x1aa   :  { %v543_v48 = vpop.xlane.xlu0 %542 }
 0x1ab   :  { %v544_v49 = vsub.f32 %v703_v47, %v543_v48 }
 0x1ad   :  { %v545_v50 = vmul.f32 1.442695, %v544_v49 }
 0x1af   :  { %720 = vpow2.f32 %v545_v50 }
 0x1b9   :  { %v721_v51 = vpop.eup %720 }
 0x1ba   :  { %547 = vadd.xlane.f32.xlu0 %v721_v51 }
 0x247   :  { %v548_v52 = vpop.xlane.xlu0 %547 }
 0x248   :  { %722 = vlog2.f32 %v548_v52 }
 0x252   :  { %v723_v53 = vpop.eup %722 }
 0x253   :  { %v550_v54 = vmul.f32 0.6931472, %v723_v53 }
 0x255   :  { %v551_v55 = vsub.f32 %v544_v49, %v550_v54 }
 0x257   :  { %552 = vst [vmem:[#allocation7] sm:$0xff] %v551_v55 }
 0x258   :  { %779 = shalt.err (!%p776_p6)
}
 0x259   :  { %s780_s15 = scalar_lea.hbm %s897_s3, 128 }
 0x25a   :  { %p781_p7 = scmp.ne.s32.totalorder %s897_s3, %s780_s15  ;;  %p784_p8 = scmp.lt.u32.totalorder %s780_s15, %s897_s3 }
 0x25c   :  { %p786_p9 = pnand %p784_p8, %p781_p7 }
 0x25e   :  { %789 = shalt.err (!%p786_p9)
}
 0x25f   :  { %562 = dma.vmem_to_hbm [thread:$0]  %s560_s12, 128, %s897_s3, [#allocation4]  }
 0x260   :  { %794 = dma.done.wait [#allocation4], 128  }
 0x261   :  { %795 = vsyncadd [#allocation4], 4294967168 }
 0x262   :  { %566 = vsyncpa [#allocation3], 1 }
 0x263   :  { %567 = vsyncpa [#allocation6], 1 }
 0x264   :  { %568 = vsyncpa [#allocation4], 1 }

</bundles_post_ra>
